<compile_context>
chip_gen: v6e
topology: v6e:2x2x1
jax: 0.10.0
libtpu: 0.0.40
codegen_flags: <defaults>
</compile_context>

<pallas_src>
import functools

import jax
import jax.numpy as jnp
from jax import lax
from jax.experimental import pallas as pl
from jax.experimental.pallas import tpu as pltpu

_CHUNK = 16                       # rows folded per inner-loop step (bf16-pack aligned)
_MAX_SUM_BLOCK_BYTES = 4 << 20    # per input stream per pipeline buffer (reductions)
_MAX_NONE_BLOCK_BYTES = 2 << 20   # per stream per buffer (elementwise 'none' path)
_VMEM_LIMIT = 48 << 20            # <= v7x physical VMEM (64 MiB); ample on v5e/v6e


def _round_up(x, m):
    return ((x + m - 1) // m) * m


# ----------------------------- kernels -------------------------------------


def _sq_sum_kernel(p_ref, t_ref, o_ref, acc_ref, *, scale, valid_rows):
    """acc += (pred - target)^2 folded into a small accumulator; the ragged
    last block is row-masked.  Writes scale * sum(acc) to SMEM at the end."""
    i = pl.program_id(0)
    last = pl.num_programs(0) - 1
    block_rows, lanes = p_ref.shape
    chunk = acc_ref.shape[0]
    nchunks = block_rows // chunk
    row0 = i * block_rows                      # global row offset of this block

    @pl.when(i == 0)
    def _():
        acc_ref[...] = jnp.zeros_like(acc_ref)

    def fold(masked):
        def body(k, acc):
            r = pl.multiple_of(k * chunk, chunk)
            p = p_ref[pl.ds(r, chunk), :].astype(jnp.float32)
            t = t_ref[pl.ds(r, chunk), :].astype(jnp.float32)
            d = p - t
            sq = d * d
            if masked:
                rid = row0 + r + lax.broadcasted_iota(jnp.int32, (chunk, lanes), 0)
                sq = jnp.where(rid < valid_rows, sq, 0.0)
            return acc + sq

        acc_ref[...] = lax.fori_loop(0, nchunks, body, acc_ref[...])

    if valid_rows % block_rows:                # static: ragged last block exists
        @pl.when(i != last)
        def _():
            fold(False)

        @pl.when(i == last)
        def _():
            fold(True)
    else:
        fold(False)

    @pl.when(i == last)
    def _():
        o_ref[0, 0] = jnp.float32(scale) * jnp.sum(acc_ref[...])


def _wsq_sum_kernel(p_ref, t_ref, w_ref, o_ref, acc_ref, wacc_ref, *,
                    scale, valid_rows):
    """Same as above but weighted; also accumulates sum(w) for the 'mean'
    denominator so the weight stream is read from HBM exactly once."""
    i = pl.program_id(0)
    last = pl.num_programs(0) - 1
    block_rows, lanes = p_ref.shape
    chunk = acc_ref.shape[0]
    nchunks = block_rows // chunk
    row0 = i * block_rows

    @pl.when(i == 0)
    def _():
        acc_ref[...] = jnp.zeros_like(acc_ref)
        wacc_ref[...] = jnp.zeros_like(wacc_ref)

    def fold(masked):
        def body(k, carry):
            acc, wacc = carry
            r = pl.multiple_of(k * chunk, chunk)
            p = p_ref[pl.ds(r, chunk), :].astype(jnp.float32)
            t = t_ref[pl.ds(r, chunk), :].astype(jnp.float32)
            w = w_ref[pl.ds(r, chunk), :].astype(jnp.float32)
            d = p - t
            sq = d * d * w
            if masked:
                rid = row0 + r + lax.broadcasted_iota(jnp.int32, (chunk, lanes), 0)
                keep = rid < valid_rows
                sq = jnp.where(keep, sq, 0.0)
                w = jnp.where(keep, w, 0.0)
            return acc + sq, wacc + w

        acc, wacc = lax.fori_loop(0, nchunks, body,
                                  (acc_ref[...], wacc_ref[...]))
        acc_ref[...] = acc
        wacc_ref[...] = wacc

    if valid_rows % block_rows:
        @pl.when(i != last)
        def _():
            fold(False)

        @pl.when(i == last)
        def _():
            fold(True)
    else:
        fold(False)

    @pl.when(i == last)
    def _():
        o_ref[0, 0] = jnp.float32(scale) * jnp.sum(acc_ref[...])
        o_ref[0, 1] = jnp.sum(wacc_ref[...])


def _sq_none_kernel(p_ref, t_ref, o_ref, *, scale):
    """Elementwise scale * (pred - target)^2 in the input dtype.  Out-of-bounds
    stores of the ragged last block are dropped by Pallas (no mask needed)."""
    p = p_ref[...].astype(jnp.float32)
    t = t_ref[...].astype(jnp.float32)
    d = p - t
    o_ref[...] = (jnp.float32(scale) * d * d).astype(o_ref.dtype)


def _wsq_none_kernel(p_ref, t_ref, w_ref, o_ref, *, scale):
    p = p_ref[...].astype(jnp.float32)
    t = t_ref[...].astype(jnp.float32)
    w = w_ref[...].astype(jnp.float32)
    d = p - t
    o_ref[...] = (jnp.float32(scale) * d * d * w).astype(o_ref.dtype)


# ------------------------- geometry / packing -------------------------------


def _choose_lanes(n):
    """Largest lane width in (512, 256, 128) dividing n -> zero-copy reshape."""
    for lanes in (512, 256, 128):
        if n % lanes == 0:
            return lanes, 0
    # TODO(synk): rare ragged case (n % 128 != 0) pays one padded input copy;
    # a fully 1-D blocked path would avoid it.
    return 128, _round_up(n, 128) - n


def _as_2d(x, pad, lanes):
    if pad:
        x = jnp.pad(jnp.ravel(x), (0, pad))
    return jnp.reshape(x, (-1, lanes))         # free (row-major bitcast) if pad == 0


def _block_rows(rows, lanes, itemsize, max_bytes):
    cap = max(_CHUNK, max_bytes // (lanes * itemsize))
    cap -= cap % _CHUNK
    return min(cap, _round_up(rows, _CHUNK))


# ------------------------- pallas_call wrappers ------------------------------


def _pallas_sq_sum(p2d, t2d, scale, block_rows, n_blocks, rows):
    lanes = p2d.shape[1]
    blk = pl.BlockSpec((block_rows, lanes), lambda i: (i, 0))
    out = pl.pallas_call(
        functools.partial(_sq_sum_kernel, scale=scale, valid_rows=rows),
        out_shape=jax.ShapeDtypeStruct((1, 1), jnp.float32),
        grid_spec=pltpu.PrefetchScalarGridSpec(
            num_scalar_prefetch=0,
            grid=(n_blocks,),
            in_specs=[blk, blk],
            out_specs=pl.BlockSpec((1, 1), lambda i: (0, 0),
                                   memory_space=pltpu.SMEM),
            scratch_shapes=[pltpu.VMEM((_CHUNK, lanes), jnp.float32)],
        ),
        compiler_params=pltpu.CompilerParams(
            dimension_semantics=("arbitrary",),
            vmem_limit_bytes=_VMEM_LIMIT),
        cost_estimate=pl.CostEstimate(
            flops=3 * p2d.size, transcendentals=0,
            bytes_accessed=(p2d.size * p2d.dtype.itemsize
                            + t2d.size * t2d.dtype.itemsize)),
    )(p2d, t2d)
    return out[0, 0]


def _pallas_wsq_sum(p2d, t2d, w2d, scale, block_rows, n_blocks, rows):
    lanes = p2d.shape[1]
    blk = pl.BlockSpec((block_rows, lanes), lambda i: (i, 0))
    out = pl.pallas_call(
        functools.partial(_wsq_sum_kernel, scale=scale, valid_rows=rows),
        out_shape=jax.ShapeDtypeStruct((1, 2), jnp.float32),
        grid_spec=pltpu.PrefetchScalarGridSpec(
            num_scalar_prefetch=0,
            grid=(n_blocks,),
            in_specs=[blk, blk, blk],
            out_specs=pl.BlockSpec((1, 2), lambda i: (0, 0),
                                   memory_space=pltpu.SMEM),
            scratch_shapes=[pltpu.VMEM((_CHUNK, lanes), jnp.float32),
                            pltpu.VMEM((_CHUNK, lanes), jnp.float32)],
        ),
        compiler_params=pltpu.CompilerParams(
            dimension_semantics=("arbitrary",),
            vmem_limit_bytes=_VMEM_LIMIT),
        cost_estimate=pl.CostEstimate(
            flops=5 * p2d.size, transcendentals=0,
            bytes_accessed=(p2d.size * p2d.dtype.itemsize
                            + t2d.size * t2d.dtype.itemsize
                            + w2d.size * w2d.dtype.itemsize)),
    )(p2d, t2d, w2d)
    return out[0, 0], out[0, 1]


def _pallas_sq_none(p2d, t2d, scale, block_rows, n_blocks, out_dtype):
    rows, lanes = p2d.shape
    blk = pl.BlockSpec((block_rows, lanes), lambda i: (i, 0))
    out_bytes = rows * lanes * jnp.dtype(out_dtype).itemsize
    return pl.pallas_call(
        functools.partial(_sq_none_kernel, scale=scale),
        out_shape=jax.ShapeDtypeStruct((rows, lanes), out_dtype),
        grid_spec=pltpu.PrefetchScalarGridSpec(
            num_scalar_prefetch=0,
            grid=(n_blocks,),
            in_specs=[blk, blk],
            out_specs=blk,
        ),
        compiler_params=pltpu.CompilerParams(
            dimension_semantics=("parallel",),
            vmem_limit_bytes=_VMEM_LIMIT),
        cost_estimate=pl.CostEstimate(
            flops=3 * p2d.size, transcendentals=0,
            bytes_accessed=(p2d.size * p2d.dtype.itemsize
                            + t2d.size * t2d.dtype.itemsize + out_bytes)),
    )(p2d, t2d)


def _pallas_wsq_none(p2d, t2d, w2d, scale, block_rows, n_blocks, out_dtype):
    rows, lanes = p2d.shape
    blk = pl.BlockSpec((block_rows, lanes), lambda i: (i, 0))
    out_bytes = rows * lanes * jnp.dtype(out_dtype).itemsize
    return pl.pallas_call(
        functools.partial(_wsq_none_kernel, scale=scale),
        out_shape=jax.ShapeDtypeStruct((rows, lanes), out_dtype),
        grid_spec=pltpu.PrefetchScalarGridSpec(
            num_scalar_prefetch=0,
            grid=(n_blocks,),
            in_specs=[blk, blk, blk],
            out_specs=blk,
        ),
        compiler_params=pltpu.CompilerParams(
            dimension_semantics=("parallel",),
            vmem_limit_bytes=_VMEM_LIMIT),
        cost_estimate=pl.CostEstimate(
            flops=4 * p2d.size, transcendentals=0,
            bytes_accessed=(p2d.size * p2d.dtype.itemsize
                            + t2d.size * t2d.dtype.itemsize
                            + w2d.size * w2d.dtype.itemsize + out_bytes)),
    )(p2d, t2d, w2d)


# ------------------------- forward-pass implementation ----------------------


@functools.partial(jax.jit,
                   static_argnames=("loss_weight", "reduction", "has_weight"))
def _mse_loss_impl(pred, target, weight, loss_weight, reduction, has_weight):
    orig_shape = pred.shape
    orig_dtype = pred.dtype
    n = pred.size
    itemsize = jnp.dtype(orig_dtype).itemsize

    if has_weight and weight.shape != orig_shape:
        # TODO(synk): broadcast weights (e.g. (N,1,H,W)) are materialized at
        # full size here (one extra HBM write + read of the weight stream); a
        # C-innermost grid with a C-independent weight index_map would avoid it.
        weight = jnp.broadcast_to(weight, orig_shape)

    lanes, pad = _choose_lanes(n)
    p2d = _as_2d(pred, pad, lanes)
    t2d = _as_2d(target, pad, lanes)
    w2d = _as_2d(weight, pad, lanes) if has_weight else None
    rows = p2d.shape[0]

    if reduction == "none":
        block_rows = _block_rows(rows, lanes, itemsize, _MAX_NONE_BLOCK_BYTES)
        n_blocks = -(-rows // block_rows)
        if has_weight:
            out2d = _pallas_wsq_none(p2d, t2d, w2d, loss_weight, block_rows,
                                     n_blocks, orig_dtype)
        else:
            out2d = _pallas_sq_none(p2d, t2d, loss_weight, block_rows,
                                    n_blocks, orig_dtype)
        flat = out2d.reshape(-1)
        if pad:
            flat = flat[:n]
        return flat.reshape(orig_shape)

    # reduction == 'mean' or 'sum'
    block_rows = _block_rows(rows, lanes, itemsize, _MAX_SUM_BLOCK_BYTES)
    n_blocks = -(-rows // block_rows)

    if not has_weight:
        # fuse loss_weight (and static 1/N for 'mean') into the kernel
        scale = loss_weight / n if reduction == "mean" else loss_weight
        total = _pallas_sq_sum(p2d, t2d, scale, block_rows, n_blocks, rows)
        return total.astype(orig_dtype)

    total, wtotal = _pallas_wsq_sum(p2d, t2d, w2d, loss_weight, block_rows,
                                    n_blocks, rows)
    if reduction == "sum":
        return total.astype(orig_dtype)
    # 'mean': basicsr semantics -> divide by the sum of the BROADCAST weight
    # (== sum(w) for full-shape weights, sum(w) * C for (N,1,H,W) weights).
    # wtotal == 0 yields inf/nan, matching the reference implementation.
    return (total / wtotal).astype(orig_dtype)


class MSELossPallas:
    """MSE (L2) loss with the squared-difference + reduction hot path in Pallas."""

    def __init__(self, loss_weight=1.0, reduction="mean"):
        if reduction not in ("none", "mean", "sum"):
            raise ValueError(f"Unsupported reduction mode: {reduction}. "
                             f"Supported ones are: ['none', 'mean', 'sum']")
        self.loss_weight = float(loss_weight)
        self.reduction = reduction

    def __call__(self, pred, target, weight=None, **kwargs):
        has_weight = weight is not None
        if not has_weight:
            weight = pred          # placeholder; ignored when has_weight=False
        return _mse_loss_impl(pred, target, weight, self.loss_weight,
                              self.reduction, has_weight)


if __name__ == "__main__":
    key = jax.random.PRNGKey(0)
    k1, k2, k3, k4 = jax.random.split(key, 4)

    N, C, H, W = 2, 4, 16, 16  # NCHW, matching the PyTorch module docstring
    pred = jax.random.normal(k1, (N, C, H, W), dtype=jnp.float32)
    target = jax.random.normal(k2, (N, C, H, W), dtype=jnp.float32)
    weight = jax.random.uniform(k3, (N, C, H, W), dtype=jnp.float32)
    weight1 = jax.random.uniform(k4, (N, 1, H, W), dtype=jnp.float32)

    # default: loss_weight=1.0, reduction='mean', weight=None
    out = MSELossPallas()(pred, target)
    jax.block_until_ready(out)
    ref = jnp.mean((pred - target) ** 2)
    assert jnp.allclose(out, ref, rtol=1e-5, atol=1e-6), (out, ref)

    # 'sum'
    out_sum = MSELossPallas(reduction="sum")(pred, target)
    assert jnp.allclose(out_sum, jnp.sum((pred - target) ** 2), rtol=1e-5)

    # 'none' (loss_weight fused in-kernel)
    out_none = MSELossPallas(loss_weight=2.0, reduction="none")(pred, target)
    assert out_none.shape == (N, C, H, W)
    assert jnp.allclose(out_none, 2.0 * (pred - target) ** 2,
                        rtol=1e-5, atol=1e-6)

    # weighted 'mean', full-shape weight
    out_wm = MSELossPallas()(pred, target, weight=weight)
    ref_wm = jnp.sum((pred - target) ** 2 * weight) / jnp.sum(weight)
    assert jnp.allclose(out_wm, ref_wm, rtol=1e-5, atol=1e-6)

    # weighted 'mean', single-channel weight (basicsr denominator sum(w) * C)
    out_wm1 = MSELossPallas()(pred, target, weight=weight1)
    ref_wm1 = jnp.sum((pred - target) ** 2 * weight1) / (jnp.sum(weight1) * C)
    assert jnp.allclose(out_wm1, ref_wm1, rtol=1e-5, atol=1e-6)

    # weighted 'sum'
    out_ws = MSELossPallas(reduction="sum")(pred, target, weight=weight)
    assert jnp.allclose(out_ws, jnp.sum((pred - target) ** 2 * weight),
                        rtol=1e-5)

    # ragged row count (rows not a multiple of block rows -> in-kernel mask)
    p_r = jax.random.normal(k1, (1, 3, 16, 16), dtype=jnp.float32)  # n=768
    t_r = jax.random.normal(k2, (1, 3, 16, 16), dtype=jnp.float32)
    out_r = MSELossPallas()(p_r, t_r)
    assert jnp.allclose(out_r, jnp.mean((p_r - t_r) ** 2), rtol=1e-5, atol=1e-6)
    out_rn = MSELossPallas(reduction="none")(p_r, t_r)
    assert jnp.allclose(out_rn, (p_r - t_r) ** 2, rtol=1e-5, atol=1e-6)

    # rare fallback: n % 128 != 0 (tiny pad to the next multiple of 128)
    p_o = jax.random.normal(k3, (2, 3, 13, 5), dtype=jnp.float32)   # n=390
    t_o = jax.random.normal(k4, (2, 3, 13, 5), dtype=jnp.float32)
    out_o = MSELossPallas(reduction="sum")(p_o, t_o)
    assert jnp.allclose(out_o, jnp.sum((p_o - t_o) ** 2), rtol=1e-5, atol=1e-5)
    out_on = MSELossPallas(reduction="none")(p_o, t_o)
    assert out_on.shape == p_o.shape
    assert jnp.allclose(out_on, (p_o - t_o) ** 2, rtol=1e-5, atol=1e-6)

    # bf16 inputs (difference computed in f32 inside the kernel)
    p_b = pred.astype(jnp.bfloat16)
    t_b = target.astype(jnp.bfloat16)
    out_b = MSELossPallas()(p_b, t_b)
    ref_b = jnp.mean((p_b.astype(jnp.float32) - t_b.astype(jnp.float32)) ** 2)
    assert jnp.allclose(out_b.astype(jnp.float32), ref_b, rtol=2e-2)

    jax.block_until_ready(out_b)
    print("KERNEL_OK")
</pallas_src>

<mosaic_0001>
module attributes {stable_mosaic.version = 11 : i64} {
  func.func @_sq_sum_kernel(%arg0: i32, %arg1: memref<16x512xf32, #tpu.memory_space<vmem>>, %arg2: memref<16x512xf32, #tpu.memory_space<vmem>>, %arg3: memref<1x1xf32, #tpu.memory_space<smem>>, %arg4: memref<16x512xf32, #tpu.memory_space<vmem>>) attributes {dimension_semantics = [#tpu.dimension_semantics<arbitrary>], iteration_bounds = array<i64: 1>, scalar_prefetch = 0 : i64, scratch_operands = 1 : i64, tpu.core_type = #tpu.core_type<tc>, window_params = [{transform_indices = @transform_0, window_bounds = array<i64: 16, 512>}, {transform_indices = @transform_1, window_bounds = array<i64: 16, 512>}, {transform_indices = @transform_2, window_bounds = array<i64: 1, 1>}]} {
    %c16_i32 = arith.constant 16 : i32
    %0 = arith.muli %arg0, %c16_i32 : i32
    %c0_i32 = arith.constant 0 : i32
    %1 = arith.cmpi eq, %arg0, %c0_i32 : i32
    %2 = arith.extui %1 : i1 to i32
    %c0_i32_0 = arith.constant 0 : i32
    %3 = arith.cmpi ne, %2, %c0_i32_0 : i32
    scf.if %3 {
      %cst = arith.constant 0.000000e+00 : f32
      %13 = vector.broadcast %cst : f32 to vector<16x512xf32>
      %c0 = arith.constant 0 : index
      %c0_7 = arith.constant 0 : index
      %14 = vector.load %arg4[%c0, %c0_7] : memref<16x512xf32, #tpu.memory_space<vmem>>, vector<16x512xf32>
      tpu.vector_store %arg4[%c0, %c0_7], %13 {strides = array<i32>} : memref<16x512xf32, #tpu.memory_space<vmem>>, vector<16x512xf32>,
    } else {
    }
    %c0_i32_1 = arith.constant 0 : i32
    %4 = arith.cmpi ne, %arg0, %c0_i32_1 : i32
    %5 = arith.extui %4 : i1 to i32
    %c0_i32_2 = arith.constant 0 : i32
    %6 = arith.cmpi ne, %5, %c0_i32_2 : i32
    scf.if %6 {
      %c0 = arith.constant 0 : index
      %c0_7 = arith.constant 0 : index
      %13 = vector.load %arg4[%c0, %c0_7] : memref<16x512xf32, #tpu.memory_space<vmem>>, vector<16x512xf32>
      %c0_i32_8 = arith.constant 0 : i32
      %c16_i32_9 = arith.constant 16 : i32
      %14 = arith.muli %c0_i32_8, %c16_i32_9 : i32
      %15 = tpu.assume_multiple %14, 16 : i32
      %16 = arith.index_cast %15 : i32 to index
      %c0_10 = arith.constant 0 : index
      %17 = vector.load %arg1[%16, %c0_10] : memref<16x512xf32, #tpu.memory_space<vmem>>, vector<16x512xf32>
      %18 = arith.index_cast %15 : i32 to index
      %c0_11 = arith.constant 0 : index
      %19 = vector.load %arg2[%18, %c0_11] : memref<16x512xf32, #tpu.memory_space<vmem>>, vector<16x512xf32>
      %20 = arith.subf %17, %19 : vector<16x512xf32>
      %21 = arith.mulf %20, %20 : vector<16x512xf32>
      %22 = arith.addf %13, %21 : vector<16x512xf32>
      %c1_i32 = arith.constant 1 : i32
      %c0_12 = arith.constant 0 : index
      %c0_13 = arith.constant 0 : index
      %23 = vector.load %arg4[%c0_12, %c0_13] : memref<16x512xf32, #tpu.memory_space<vmem>>, vector<16x512xf32>
      tpu.vector_store %arg4[%c0_12, %c0_13], %22 {strides = array<i32>} : memref<16x512xf32, #tpu.memory_space<vmem>>, vector<16x512xf32>,
    } else {
    }
    %c0_i32_3 = arith.constant 0 : i32
    %7 = arith.cmpi eq, %arg0, %c0_i32_3 : i32
    %8 = arith.extui %7 : i1 to i32
    %c0_i32_4 = arith.constant 0 : i32
    %9 = arith.cmpi ne, %8, %c0_i32_4 : i32
    scf.if %9 {
      %c0 = arith.constant 0 : index
      %c0_7 = arith.constant 0 : index
      %13 = vector.load %arg4[%c0, %c0_7] : memref<16x512xf32, #tpu.memory_space<vmem>>, vector<16x512xf32>
      %c0_i32_8 = arith.constant 0 : i32
      %c16_i32_9 = arith.constant 16 : i32
      %14 = arith.muli %c0_i32_8, %c16_i32_9 : i32
      %15 = tpu.assume_multiple %14, 16 : i32
      %16 = arith.index_cast %15 : i32 to index
      %c0_10 = arith.constant 0 : index
      %17 = vector.load %arg1[%16, %c0_10] : memref<16x512xf32, #tpu.memory_space<vmem>>, vector<16x512xf32>
      %18 = arith.index_cast %15 : i32 to index
      %c0_11 = arith.constant 0 : index
      %19 = vector.load %arg2[%18, %c0_11] : memref<16x512xf32, #tpu.memory_space<vmem>>, vector<16x512xf32>
      %20 = arith.subf %17, %19 : vector<16x512xf32>
      %21 = arith.mulf %20, %20 : vector<16x512xf32>
      %22 = arith.addi %0, %15 : i32
      %23 = tpu.iota {dimensions = array<i32: 0>} : vector<16x512xi32>
      %24 = vector.broadcast %22 : i32 to vector<16x512xi32>
      %25 = arith.addi %24, %23 : vector<16x512xi32>
      %c4_i32 = arith.constant 4 : i32
      %26 = vector.broadcast %c4_i32 : i32 to vector<16x512xi32>
      %27 = arith.cmpi slt, %25, %26 : vector<16x512xi32>
      %cst = arith.constant 0.000000e+00 : f32
      %28 = vector.broadcast %cst : f32 to vector<16x512xf32>
      %29 = arith.select %27, %21, %28 : vector<16x512xi1>, vector<16x512xf32>
      %30 = arith.addf %13, %29 : vector<16x512xf32>
      %c1_i32 = arith.constant 1 : i32
      %c0_12 = arith.constant 0 : index
      %c0_13 = arith.constant 0 : index
      %31 = vector.load %arg4[%c0_12, %c0_13] : memref<16x512xf32, #tpu.memory_space<vmem>>, vector<16x512xf32>
      tpu.vector_store %arg4[%c0_12, %c0_13], %30 {strides = array<i32>} : memref<16x512xf32, #tpu.memory_space<vmem>>, vector<16x512xf32>,
    } else {
    }
    %c0_i32_5 = arith.constant 0 : i32
    %10 = arith.cmpi eq, %arg0, %c0_i32_5 : i32
    %11 = arith.extui %10 : i1 to i32
    %c0_i32_6 = arith.constant 0 : i32
    %12 = arith.cmpi ne, %11, %c0_i32_6 : i32
    scf.if %12 {
      %c0 = arith.constant 0 : index
      %c0_7 = arith.constant 0 : index
      %13 = vector.load %arg4[%c0, %c0_7] : memref<16x512xf32, #tpu.memory_space<vmem>>, vector<16x512xf32>
      %14 = vector.shape_cast %13 : vector<16x512xf32> to vector<1x16x512xf32>
      %cst = arith.constant dense<0.000000e+00> : vector<1xf32>
      %15 = vector.multi_reduction <add>, %14, %cst [1, 2] : vector<1x16x512xf32> to vector<1xf32>
      %16 = vector.shape_cast %15 : vector<1xf32> to vector<1x1x1xf32>
      %17 = vector.extract %16[0, 0, 0] : f32 from vector<1x1x1xf32>
      %cst_8 = arith.constant 4.8828125E-4 : f32
      %18 = arith.mulf %cst_8, %17 : f32
      %c0_9 = arith.constant 0 : index
      %c0_10 = arith.constant 0 : index
      %19 = memref.load %arg3[%c0_9, %c0_10] : memref<1x1xf32, #tpu.memory_space<smem>>
      memref.store %18, %arg3[%c0_9, %c0_10] : memref<1x1xf32, #tpu.memory_space<smem>>
    } else {
    }
    return
  }
  func.func @transform_0(%arg0: i32) -> (i32, i32) {
    %c0_i32 = arith.constant 0 : i32
    %c0_i32_0 = arith.constant 0 : i32
    return %arg0, %c0_i32 : i32, i32
  }
  func.func @transform_1(%arg0: i32) -> (i32, i32) {
    %c0_i32 = arith.constant 0 : i32
    %c0_i32_0 = arith.constant 0 : i32
    return %arg0, %c0_i32 : i32, i32
  }
  func.func @transform_2(%arg0: i32) -> (i32, i32) {
    %c0_i32 = arith.constant 0 : i32
    %c0_i32_0 = arith.constant 0 : i32
    %c0_i32_1 = arith.constant 0 : i32
    return %c0_i32, %c0_i32_0 : i32, i32
  }
}

</mosaic_0001>

<bundles_post_ra>
// kernel: _mse_loss_impl.1
= control target key start
LH: loop header
LB: loop body
LE: loop exit
PB: predicated region body
PF: predicated region fallthrough
CT: control target
= control target key end

     0   :  { %v163_v3 = vlaneseq  ;;  %s315_s0 = inlined_call_operand.vmem [shape: f32[4,512], index: 0, kind: input, shape index: {}]   ;;  %s316_s1 = inlined_call_operand.vmem [shape: f32[4,512], index: 1, kind: input, shape index: {}]   ;;  %s317_s2 = inlined_call_operand.hbm [shape: f32[1,1], index: 2, kind: output, shape index: {}]  }
   0x1   :  { %v128_v0 = vld [vmem:[%s315_s0] sm:$0xff]  ;;  %v129_v1 = vld [vmem:[%s315_s0 + $0x8] sm:$0xff]  ;;  %v130_v2 = vld [vmem:[%s315_s0 + $0x10] sm:$0xff] }
   0x2   :  { %v131_v4 = vld [vmem:[%s315_s0 + $0x18] sm:$0xff]  ;;  %v138_v5 = vld [vmem:[%s316_s1] sm:$0xff]  ;;  %v139_v6 = vld [vmem:[%s316_s1 + $0x8] sm:$0xff]  ;;  %v164_v11 = vshrl.u32 %v163_v3, 7 }
   0x3   :  { %v140_v7 = vld [vmem:[%s316_s1 + $0x10] sm:$0xff]  ;;  %v141_v8 = vld [vmem:[%s316_s1 + $0x18] sm:$0xff]  ;;  %v146_v9 = vsub.f32 %v128_v0, %v138_v5  ;;  %v147_v10 = vsub.f32 %v129_v1, %v139_v6 }
   0x4   :  { %7 = vsyncpa [#allocation4], 0  ;;  %v148_v12 = vsub.f32 %v130_v2, %v140_v7  ;;  %v149_v13 = vsub.f32 %v131_v4, %v141_v8  ;;  %vm169_vm0 = vcmp.lt.s32.totalorder %v164_v11, 4  ;;  %s272_s25 = smov [#allocation3]  }
   0x5   :  { %v154_v14 = vmul.f32 %v146_v9, %v146_v9  ;;  %v155_v15 = vmul.f32 %v147_v10, %v147_v10 }
   0x6   :  { %v156_v16 = vmul.f32 %v148_v12, %v148_v12  ;;  %v157_v17 = vmul.f32 %v149_v13, %v149_v13 }
   0x8   :  { %v179_v18 = vcombine.low %v154_v14, %v156_v16  ;;  %v180_v19 = vcombine.high %v154_v14, %v156_v16  ;;  %v181_v20 = vcombine.low %v155_v15, %v157_v17  ;;  %v182_v21 = vcombine.high %v155_v15, %v157_v17 }
   0xa   :  { %v195_v22 = vsel %vm169_vm0, %v179_v18, 0.0  ;;  %v196_v23 = vsel %vm169_vm0, %v180_v19, 0.0  ;;  %v197_v24 = vsel %vm169_vm0, %v181_v20, 0.0  ;;  %v198_v26 = vsel %vm169_vm0, %v182_v21, 0.0 }
   0xb   :  { %v227_v25 = vadd.f32 %v196_v23, %v195_v22 }
   0xd   :  { %v228_v27 = vadd.f32 %v227_v25, %v197_v24 }
   0xf   :  { %v229_v28 = vadd.f32 %v228_v27, %v198_v26 }
  0x11   :  { %234 = vadd.xlane.f32.xlu0 %v229_v28 }
  0x9a   :  { %v235_v29 = vpop.xlane.xlu0 %234 }
  0x9b   :  { %v236_v30 = vrot.slane %v235_v29, 4 }
  0x9d   :  { %v237_v31 = vadd.f32 %v236_v30, %v235_v29 }
  0x9f   :  { %v238_v32 = vrot.slane %v237_v31, 2 }
  0xa1   :  { %v239_v33 = vadd.f32 %v238_v32, %v237_v31 }
  0xa3   :  { %v240_v34 = vrot.slane %v239_v33, 1 }
  0xa5   :  { %v241_v35 = vadd.f32 %v240_v34, %v239_v33 }
  0xa7   :  { %259 = vpush %v241_v35 }
  0xd8   :  { %s260_s0 = spop %259 }
  0xd9   :  { %s243_s1 = smul.f32 0.00048828125, %s260_s0 }
  0xdb   :  { %245 = sst [smem:[#allocation3]] %s243_s1 }
  0xdc   :  { %253 = dma.smem_to_hbm %s272_s25, 16, %s317_s2, [#allocation4]  }
  0xdd   :  { %270 = dma.done.wait [#allocation4], 16  }
  0xde   :  { %271 = vsyncadd [#allocation4], 4294967280 }
  0xdf   :  { %257 = sfence }
  0xe0   :  { %258 = vsyncpa [#allocation4], 1 }

</bundles_post_ra>
